<compile_context>
chip_gen: v6e
topology: v6e:2x2x1
jax: 0.10.0
libtpu: 0.0.40
codegen_flags: <defaults>
</compile_context>

<pallas_src>
import numpy as np
import jax
import jax.numpy as jnp
from jax.experimental import pallas as pl
from jax.experimental.pallas import tpu as pltpu

BN_EPS = 1e-5


def _stem_kernel(x_ref, w1_ref, w2_ref, w3_ref, sh1_ref, sh2_ref, sh3_ref,
                 rdiv_ref, o_ref, pad1_ref, pad2_ref, pad3_ref, pad4_ref):
    b_blk, c_in, L = x_ref.shape
    L1 = L // 2
    L_pool = rdiv_ref.shape[0]
    L_pad4 = pad4_ref.shape[0]
    W2 = w1_ref.shape[2]
    W = w3_ref.shape[2]

    sh1 = sh1_ref[...]          # (1, W2) f32 folded-BN shift
    sh2 = sh2_ref[...]          # (1, W2)
    sh3 = sh3_ref[...]          # (1, W)
    rdiv = rdiv_ref[...]        # (L_pool, 1) f32 pool reciprocal divisors

    # Zero the padding rows of the staging buffers once per grid step; the
    # interiors are overwritten for every batch element below.
    pad1_ref[0:1, :] = jnp.zeros((1, c_in), jnp.float32)
    pad1_ref[L + 1:L + 2, :] = jnp.zeros((1, c_in), jnp.float32)
    pad2_ref[0:1, :] = jnp.zeros((1, W2), jnp.float32)
    pad2_ref[L1 + 1:L1 + 2, :] = jnp.zeros((1, W2), jnp.float32)
    pad3_ref[0:1, :] = jnp.zeros((1, W2), jnp.float32)
    pad3_ref[L1 + 1:L1 + 2, :] = jnp.zeros((1, W2), jnp.float32)
    pad4_ref[0:1, :] = jnp.zeros((1, W), jnp.float32)
    pad4_ref[L1 + 1:L_pad4, :] = jnp.zeros((L_pad4 - L1 - 1, W), jnp.float32)

    def conv3(tap_fn, w_ref, shift):
        # kernel-size-3 conv as 3 accumulating MXU dots (bf16 in, f32 acc),
        # followed by the folded-BN shift and ReLU.
        acc = jnp.dot(tap_fn(0), w_ref[0], preferred_element_type=jnp.float32)
        for k in (1, 2):
            acc = acc + jnp.dot(tap_fn(k), w_ref[k],
                                preferred_element_type=jnp.float32)
        return jnp.maximum(acc + shift, 0.0)

    for b in range(b_blk):
        # Input slab arrives channel-first (Cin, L); transpose the tiny slab
        # in-kernel (HBM DMA stays lane-dense, no wrapper transpose pass) and
        # stage it into the zero-padded scratch.
        xt = x_ref[b].astype(jnp.float32).T                       # (L, Cin)
        pad1_ref[1:L + 1, :] = xt

        # conv1: kernel 3, stride 2, pad 1 -> sublane-strided taps (no O(L^2)
        # selection matmul, and only the needed output rows are computed).
        h1 = conv3(
            lambda k: pad1_ref[pl.ds(k, L1, stride=2), :].astype(jnp.bfloat16),
            w1_ref, sh1)                                          # (L1, W2)

        # conv2: kernel 3, stride 1, pad 1.
        pad2_ref[1:L1 + 1, :] = h1
        h2 = conv3(lambda k: pad2_ref[k:k + L1, :].astype(jnp.bfloat16),
                   w2_ref, sh2)                                   # (L1, W2)

        # conv3: kernel 3, stride 1, pad 1.
        pad3_ref[1:L1 + 1, :] = h2
        h3 = conv3(lambda k: pad3_ref[k:k + L1, :].astype(jnp.bfloat16),
                   w3_ref, sh3)                                   # (L1, W)

        # AvgPool1d(kernel 3, stride 2, pad 1, ceil_mode=True,
        # count_include_pad=True): three strided taps summed on the VPU,
        # scaled by the precomputed 1/divisor (handles the clipped last window
        # via the extra zeroed tail rows of pad4).
        pad4_ref[1:L1 + 1, :] = h3
        psum = (pad4_ref[pl.ds(0, L_pool, stride=2), :]
                + pad4_ref[pl.ds(1, L_pool, stride=2), :]
                + pad4_ref[pl.ds(2, L_pool, stride=2), :])
        pooled = psum * rdiv                                      # (L_pool, W)

        # Write back in the native NCL layout: (W, L_pool).
        o_ref[b] = pooled.T.astype(o_ref.dtype)


def _fold_bn(gamma, beta, mean, var):
    scale = gamma / jnp.sqrt(var + BN_EPS)                        # (C,)
    shift = (beta - mean * scale)[None, :].astype(jnp.float32)    # (1, C)
    return scale, shift


def _prep_weight(w_oik, scale):
    # PyTorch (Cout, Cin, K) -> (K, Cin, Cout), fold the BN scale into the
    # output channels, cast to bf16 for the MXU.
    w = jnp.transpose(w_oik, (2, 1, 0)) * scale[None, None, :]
    return w.astype(jnp.bfloat16)


def _pool_geometry(L3):
    # AvgPool1d(kernel=3, stride=2, padding=1, ceil_mode=True,
    # count_include_pad=True): output length and per-window 1/divisor.
    L_pool = -((L3 + 2 - 3) // -2) + 1
    if (L_pool - 1) * 2 - 1 >= L3 + 1:     # last window must start in input+pad
        L_pool -= 1
    rdiv = np.array([[1.0 / min(3, (L3 + 2) - 2 * i)] for i in range(L_pool)],
                    np.float32)
    return L_pool, rdiv


def stem_forward(x_ncl, params):
    """x_ncl: (N, Cin, L) float32, PyTorch layout. Returns (N, W, L_pool)."""
    N, Cin, L = x_ncl.shape
    assert L % 2 == 0, "even input length required"
    W2 = params["w1"].shape[0]                                    # width // 2
    W = params["w3"].shape[0]                                     # width
    L1 = L // 2
    L_pool, rdiv_np = _pool_geometry(L1)
    L_pad4 = max(L1 + 2, 2 * L_pool + 1)     # room for the clipped last window

    s1, sh1 = _fold_bn(params["g1"], params["b1"], params["m1"], params["v1"])
    s2, sh2 = _fold_bn(params["g2"], params["b2"], params["m2"], params["v2"])
    s3, sh3 = _fold_bn(params["g3"], params["b3"], params["m3"], params["v3"])
    w1 = _prep_weight(params["w1"], s1)                           # (3, Cin, W2)
    w2 = _prep_weight(params["w2"], s2)                           # (3, W2, W2)
    w3 = _prep_weight(params["w3"], s3)                           # (3, W2, W)
    rdiv = jnp.asarray(rdiv_np)                                   # (L_pool, 1)

    # Block several batch elements per grid step (largest divisor of N <= 8).
    b_blk = max(d for d in range(1, min(N, 8) + 1) if N % d == 0)

    return pl.pallas_call(
        _stem_kernel,
        out_shape=jax.ShapeDtypeStruct((N, W, L_pool), jnp.float32),
        grid=(N // b_blk,),
        in_specs=[
            pl.BlockSpec((b_blk, Cin, L), lambda n: (n, 0, 0)),
            pl.BlockSpec((3, Cin, W2), lambda n: (0, 0, 0)),
            pl.BlockSpec((3, W2, W2), lambda n: (0, 0, 0)),
            pl.BlockSpec((3, W2, W), lambda n: (0, 0, 0)),
            pl.BlockSpec((1, W2), lambda n: (0, 0)),
            pl.BlockSpec((1, W2), lambda n: (0, 0)),
            pl.BlockSpec((1, W), lambda n: (0, 0)),
            pl.BlockSpec((L_pool, 1), lambda n: (0, 0)),
        ],
        out_specs=pl.BlockSpec((b_blk, W, L_pool), lambda n: (n, 0, 0)),
        scratch_shapes=[
            pltpu.VMEM((L + 2, Cin), jnp.float32),    # padded conv1 input
            pltpu.VMEM((L1 + 2, W2), jnp.float32),    # padded h1
            pltpu.VMEM((L1 + 2, W2), jnp.float32),    # padded h2
            pltpu.VMEM((L_pad4, W), jnp.float32),     # padded h3 (pool taps)
        ],
        compiler_params=pltpu.CompilerParams(
            dimension_semantics=("parallel",)),
    )(x_ncl.astype(jnp.float32), w1, w2, w3, sh1, sh2, sh3, rdiv)


def stem_reference(x_ncl, params):
    """Pure-JAX f32 reference matching PyTorch semantics (NCL layout)."""
    def conv(x, w, stride):
        return jax.lax.conv_general_dilated(
            x, w, (stride,), [(1, 1)], dimension_numbers=("NCH", "OIH", "NCH"))

    def bn_relu(x, g, b, m, v):
        y = (x - m[None, :, None]) / jnp.sqrt(v[None, :, None] + BN_EPS)
        return jax.nn.relu(y * g[None, :, None] + b[None, :, None])

    h = bn_relu(conv(x_ncl, params["w1"], 2),
                params["g1"], params["b1"], params["m1"], params["v1"])
    h = bn_relu(conv(h, params["w2"], 1),
                params["g2"], params["b2"], params["m2"], params["v2"])
    h = bn_relu(conv(h, params["w3"], 1),
                params["g3"], params["b3"], params["m3"], params["v3"])

    L3 = h.shape[-1]
    L_pool, rdiv = _pool_geometry(L3)
    hp = jnp.pad(h, ((0, 0), (0, 0), (1, 1)))
    cols = []
    for i in range(L_pool):
        start = 2 * i
        stop = min(start + 3, L3 + 2)
        cols.append(hp[:, :, start:stop].sum(-1) * rdiv[i, 0])
    return jnp.stack(cols, axis=-1)


def make_params(key, in_chan, width):
    W2 = width // 2
    ks = jax.random.split(key, 12)

    def conv_w(k, cout, cin):
        fan = cin * 3
        return jax.random.normal(k, (cout, cin, 3), jnp.float32) / np.sqrt(fan)

    def bn(kg, kb, km, kv, c):
        g = 0.5 + jax.random.uniform(kg, (c,), jnp.float32)
        b = 0.1 * jax.random.normal(kb, (c,), jnp.float32)
        m = 0.1 * jax.random.normal(km, (c,), jnp.float32)
        v = 0.5 + jax.random.uniform(kv, (c,), jnp.float32)
        return g, b, m, v

    p = {}
    p["w1"] = conv_w(ks[0], W2, in_chan)
    p["w2"] = conv_w(ks[1], W2, W2)
    p["w3"] = conv_w(ks[2], width, W2)
    p["g1"], p["b1"], p["m1"], p["v1"] = bn(ks[3], ks[4], ks[5], ks[6], W2)
    p["g2"], p["b2"], p["m2"], p["v2"] = bn(ks[7], ks[8], ks[9], ks[10], W2)
    k3 = jax.random.split(ks[11], 4)
    p["g3"], p["b3"], p["m3"], p["v3"] = bn(k3[0], k3[1], k3[2], k3[3], width)
    return p


if __name__ == "__main__":
    key = jax.random.PRNGKey(0)
    kx, kp = jax.random.split(key)

    batch, in_chan, length, width = 2, 4, 16, 32
    x = jax.random.normal(kx, (batch, in_chan, length), jnp.float32)  # NCL
    params = make_params(kp, in_chan, width)

    out = jax.block_until_ready(stem_forward(x, params))     # (N, W, L_pool)
    ref = jax.block_until_ready(stem_reference(x, params))

    assert out.shape == ref.shape, (out.shape, ref.shape)
    # bf16 matmul operands with f32 accumulation -> compare at bf16-level tol.
    np.testing.assert_allclose(np.asarray(out), np.asarray(ref),
                               rtol=2e-2, atol=2e-2)
    print("KERNEL_OK")
</pallas_src>

<mosaic_0001>
module attributes {stable_mosaic.version = 11 : i64} {
  func.func @_stem_kernel(%arg0: i32, %arg1: memref<2x4x16xf32, #tpu.memory_space<vmem>>, %arg2: memref<3x4x16xbf16, #tpu.memory_space<vmem>>, %arg3: memref<3x16x16xbf16, #tpu.memory_space<vmem>>, %arg4: memref<3x16x32xbf16, #tpu.memory_space<vmem>>, %arg5: memref<1x16xf32, #tpu.memory_space<vmem>>, %arg6: memref<1x16xf32, #tpu.memory_space<vmem>>, %arg7: memref<1x32xf32, #tpu.memory_space<vmem>>, %arg8: memref<5x1xf32, #tpu.memory_space<vmem>>, %arg9: memref<2x32x5xf32, #tpu.memory_space<vmem>>, %arg10: memref<18x4xf32, #tpu.memory_space<vmem>>, %arg11: memref<10x16xf32, #tpu.memory_space<vmem>>, %arg12: memref<10x16xf32, #tpu.memory_space<vmem>>, %arg13: memref<11x32xf32, #tpu.memory_space<vmem>>) attributes {dimension_semantics = [#tpu.dimension_semantics<parallel>], iteration_bounds = array<i64: 1>, scalar_prefetch = 0 : i64, scratch_operands = 4 : i64, tpu.core_type = #tpu.core_type<tc>, window_params = [{transform_indices = @transform_0, window_bounds = array<i64: 2, 4, 16>}, {pipeline_mode = #tpu.pipeline_mode<synchronous>, transform_indices = @transform_1, window_bounds = array<i64: 3, 4, 16>}, {pipeline_mode = #tpu.pipeline_mode<synchronous>, transform_indices = @transform_2, window_bounds = array<i64: 3, 16, 16>}, {pipeline_mode = #tpu.pipeline_mode<synchronous>, transform_indices = @transform_3, window_bounds = array<i64: 3, 16, 32>}, {pipeline_mode = #tpu.pipeline_mode<synchronous>, transform_indices = @transform_4, window_bounds = array<i64: 1, 16>}, {pipeline_mode = #tpu.pipeline_mode<synchronous>, transform_indices = @transform_5, window_bounds = array<i64: 1, 16>}, {pipeline_mode = #tpu.pipeline_mode<synchronous>, transform_indices = @transform_6, window_bounds = array<i64: 1, 32>}, {pipeline_mode = #tpu.pipeline_mode<synchronous>, transform_indices = @transform_7, window_bounds = array<i64: 5, 1>}, {transform_indices = @transform_8, window_bounds = array<i64: 2, 32, 5>}]} {
    %c0 = arith.constant 0 : index
    %c0_0 = arith.constant 0 : index
    %0 = vector.load %arg5[%c0, %c0_0] : memref<1x16xf32, #tpu.memory_space<vmem>>, vector<1x16xf32>
    %c0_1 = arith.constant 0 : index
    %c0_2 = arith.constant 0 : index
    %1 = vector.load %arg6[%c0_1, %c0_2] : memref<1x16xf32, #tpu.memory_space<vmem>>, vector<1x16xf32>
    %c0_3 = arith.constant 0 : index
    %c0_4 = arith.constant 0 : index
    %2 = vector.load %arg7[%c0_3, %c0_4] : memref<1x32xf32, #tpu.memory_space<vmem>>, vector<1x32xf32>
    %c0_5 = arith.constant 0 : index
    %c0_6 = arith.constant 0 : index
    %3 = vector.load %arg8[%c0_5, %c0_6] : memref<5x1xf32, #tpu.memory_space<vmem>>, vector<5x1xf32>
    %cst = arith.constant 0.000000e+00 : f32
    %4 = vector.broadcast %cst : f32 to vector<1x4xf32>
    %c0_7 = arith.constant 0 : index
    %c0_8 = arith.constant 0 : index
    %5 = vector.load %arg10[%c0_7, %c0_8] : memref<18x4xf32, #tpu.memory_space<vmem>>, vector<1x4xf32>
    tpu.vector_store %arg10[%c0_7, %c0_8], %4 {strides = array<i32>} : memref<18x4xf32, #tpu.memory_space<vmem>>, vector<1x4xf32>,
    %cst_9 = arith.constant 0.000000e+00 : f32
    %6 = vector.broadcast %cst_9 : f32 to vector<1x4xf32>
    %c17 = arith.constant 17 : index
    %c0_10 = arith.constant 0 : index
    %7 = vector.load %arg10[%c17, %c0_10] : memref<18x4xf32, #tpu.memory_space<vmem>>, vector<1x4xf32>
    tpu.vector_store %arg10[%c17, %c0_10], %6 {strides = array<i32>} : memref<18x4xf32, #tpu.memory_space<vmem>>, vector<1x4xf32>,
    %cst_11 = arith.constant 0.000000e+00 : f32
    %8 = vector.broadcast %cst_11 : f32 to vector<1x16xf32>
    %c0_12 = arith.constant 0 : index
    %c0_13 = arith.constant 0 : index
    %9 = vector.load %arg11[%c0_12, %c0_13] : memref<10x16xf32, #tpu.memory_space<vmem>>, vector<1x16xf32>
    tpu.vector_store %arg11[%c0_12, %c0_13], %8 {strides = array<i32>} : memref<10x16xf32, #tpu.memory_space<vmem>>, vector<1x16xf32>,
    %cst_14 = arith.constant 0.000000e+00 : f32
    %10 = vector.broadcast %cst_14 : f32 to vector<1x16xf32>
    %c9 = arith.constant 9 : index
    %c0_15 = arith.constant 0 : index
    %11 = vector.load %arg11[%c9, %c0_15] : memref<10x16xf32, #tpu.memory_space<vmem>>, vector<1x16xf32>
    tpu.vector_store %arg11[%c9, %c0_15], %10 {strides = array<i32>} : memref<10x16xf32, #tpu.memory_space<vmem>>, vector<1x16xf32>,
    %cst_16 = arith.constant 0.000000e+00 : f32
    %12 = vector.broadcast %cst_16 : f32 to vector<1x16xf32>
    %c0_17 = arith.constant 0 : index
    %c0_18 = arith.constant 0 : index
    %13 = vector.load %arg12[%c0_17, %c0_18] : memref<10x16xf32, #tpu.memory_space<vmem>>, vector<1x16xf32>
    tpu.vector_store %arg12[%c0_17, %c0_18], %12 {strides = array<i32>} : memref<10x16xf32, #tpu.memory_space<vmem>>, vector<1x16xf32>,
    %cst_19 = arith.constant 0.000000e+00 : f32
    %14 = vector.broadcast %cst_19 : f32 to vector<1x16xf32>
    %c9_20 = arith.constant 9 : index
    %c0_21 = arith.constant 0 : index
    %15 = vector.load %arg12[%c9_20, %c0_21] : memref<10x16xf32, #tpu.memory_space<vmem>>, vector<1x16xf32>
    tpu.vector_store %arg12[%c9_20, %c0_21], %14 {strides = array<i32>} : memref<10x16xf32, #tpu.memory_space<vmem>>, vector<1x16xf32>,
    %cst_22 = arith.constant 0.000000e+00 : f32
    %16 = vector.broadcast %cst_22 : f32 to vector<1x32xf32>
    %c0_23 = arith.constant 0 : index
    %c0_24 = arith.constant 0 : index
    %17 = vector.load %arg13[%c0_23, %c0_24] : memref<11x32xf32, #tpu.memory_space<vmem>>, vector<1x32xf32>
    tpu.vector_store %arg13[%c0_23, %c0_24], %16 {strides = array<i32>} : memref<11x32xf32, #tpu.memory_space<vmem>>, vector<1x32xf32>,
    %cst_25 = arith.constant 0.000000e+00 : f32
    %18 = vector.broadcast %cst_25 : f32 to vector<2x32xf32>
    %c9_26 = arith.constant 9 : index
    %c0_27 = arith.constant 0 : index
    %19 = vector.load %arg13[%c9_26, %c0_27] : memref<11x32xf32, #tpu.memory_space<vmem>>, vector<2x32xf32>
    tpu.vector_store %arg13[%c9_26, %c0_27], %18 {strides = array<i32>} : memref<11x32xf32, #tpu.memory_space<vmem>>, vector<2x32xf32>,
    %c0_28 = arith.constant 0 : index
    %c0_29 = arith.constant 0 : index
    %c0_30 = arith.constant 0 : index
    %20 = vector.load %arg1[%c0_28, %c0_29, %c0_30] : memref<2x4x16xf32, #tpu.memory_space<vmem>>, vector<1x4x16xf32>
    %21 = vector.shape_cast %20 : vector<1x4x16xf32> to vector<4x16xf32>
    %22 = tpu.transpose %21, [1, 0] : vector<4x16xf32> -> vector<16x4xf32>
    %c1 = arith.constant 1 : index
    %c0_31 = arith.constant 0 : index
    %23 = vector.load %arg10[%c1, %c0_31] : memref<18x4xf32, #tpu.memory_space<vmem>>, vector<16x4xf32>
    tpu.vector_store %arg10[%c1, %c0_31], %22 {strides = array<i32>} : memref<18x4xf32, #tpu.memory_space<vmem>>, vector<16x4xf32>,
    %c0_32 = arith.constant 0 : index
    %c0_33 = arith.constant 0 : index
    %24 = tpu.strided_load %arg10[%c0_32, %c0_33] {strides = array<i32: 2, 1>} : memref<18x4xf32, #tpu.memory_space<vmem>>, vector<8x4xf32>
    %25 = arith.truncf %24 : vector<8x4xf32> to vector<8x4xbf16>
    %c0_34 = arith.constant 0 : index
    %c0_35 = arith.constant 0 : index
    %c0_36 = arith.constant 0 : index
    %26 = vector.load %arg2[%c0_34, %c0_35, %c0_36] : memref<3x4x16xbf16, #tpu.memory_space<vmem>>, vector<1x4x16xbf16>
    %27 = vector.shape_cast %26 : vector<1x4x16xbf16> to vector<4x16xbf16>
    %cst_37 = arith.constant dense<0.000000e+00> : vector<8x16xf32>
    %28 = tpu.matmul %25, %27, %cst_37 {dimension_numbers = #tpu.dot_dimension_numbers<[1], [0], [0], [1], [0, 0, 1, 1], [], []>} : vector<8x4xbf16>, vector<4x16xbf16>, vector<8x16xf32> -> vector<8x16xf32>
    %c1_38 = arith.constant 1 : index
    %c0_39 = arith.constant 0 : index
    %29 = tpu.strided_load %arg10[%c1_38, %c0_39] {strides = array<i32: 2, 1>} : memref<18x4xf32, #tpu.memory_space<vmem>>, vector<8x4xf32>
    %30 = arith.truncf %29 : vector<8x4xf32> to vector<8x4xbf16>
    %c1_40 = arith.constant 1 : index
    %c0_41 = arith.constant 0 : index
    %c0_42 = arith.constant 0 : index
    %31 = vector.load %arg2[%c1_40, %c0_41, %c0_42] : memref<3x4x16xbf16, #tpu.memory_space<vmem>>, vector<1x4x16xbf16>
    %32 = vector.shape_cast %31 : vector<1x4x16xbf16> to vector<4x16xbf16>
    %cst_43 = arith.constant dense<0.000000e+00> : vector<8x16xf32>
    %33 = tpu.matmul %30, %32, %cst_43 {dimension_numbers = #tpu.dot_dimension_numbers<[1], [0], [0], [1], [0, 0, 1, 1], [], []>} : vector<8x4xbf16>, vector<4x16xbf16>, vector<8x16xf32> -> vector<8x16xf32>
    %34 = arith.addf %28, %33 : vector<8x16xf32>
    %c2 = arith.constant 2 : index
    %c0_44 = arith.constant 0 : index
    %35 = tpu.strided_load %arg10[%c2, %c0_44] {strides = array<i32: 2, 1>} : memref<18x4xf32, #tpu.memory_space<vmem>>, vector<8x4xf32>
    %36 = arith.truncf %35 : vector<8x4xf32> to vector<8x4xbf16>
    %c2_45 = arith.constant 2 : index
    %c0_46 = arith.constant 0 : index
    %c0_47 = arith.constant 0 : index
    %37 = vector.load %arg2[%c2_45, %c0_46, %c0_47] : memref<3x4x16xbf16, #tpu.memory_space<vmem>>, vector<1x4x16xbf16>
    %38 = vector.shape_cast %37 : vector<1x4x16xbf16> to vector<4x16xbf16>
    %cst_48 = arith.constant dense<0.000000e+00> : vector<8x16xf32>
    %39 = tpu.matmul %36, %38, %cst_48 {dimension_numbers = #tpu.dot_dimension_numbers<[1], [0], [0], [1], [0, 0, 1, 1], [], []>} : vector<8x4xbf16>, vector<4x16xbf16>, vector<8x16xf32> -> vector<8x16xf32>
    %40 = arith.addf %34, %39 : vector<8x16xf32>
    %41 = vector.broadcast %0 : vector<1x16xf32> to vector<8x16xf32>
    %42 = arith.addf %40, %41 : vector<8x16xf32>
    %cst_49 = arith.constant 0.000000e+00 : f32
    %43 = vector.broadcast %cst_49 : f32 to vector<8x16xf32>
    %44 = arith.maximumf %42, %43 : vector<8x16xf32>
    %c1_50 = arith.constant 1 : index
    %c0_51 = arith.constant 0 : index
    %45 = vector.load %arg11[%c1_50, %c0_51] : memref<10x16xf32, #tpu.memory_space<vmem>>, vector<8x16xf32>
    tpu.vector_store %arg11[%c1_50, %c0_51], %44 {strides = array<i32>} : memref<10x16xf32, #tpu.memory_space<vmem>>, vector<8x16xf32>,
    %c0_52 = arith.constant 0 : index
    %c0_53 = arith.constant 0 : index
    %46 = vector.load %arg11[%c0_52, %c0_53] : memref<10x16xf32, #tpu.memory_space<vmem>>, vector<8x16xf32>
    %47 = arith.truncf %46 : vector<8x16xf32> to vector<8x16xbf16>
    %c0_54 = arith.constant 0 : index
    %c0_55 = arith.constant 0 : index
    %c0_56 = arith.constant 0 : index
    %48 = vector.load %arg3[%c0_54, %c0_55, %c0_56] : memref<3x16x16xbf16, #tpu.memory_space<vmem>>, vector<1x16x16xbf16>
    %49 = vector.shape_cast %48 : vector<1x16x16xbf16> to vector<16x16xbf16>
    %cst_57 = arith.constant dense<0.000000e+00> : vector<8x16xf32>
    %50 = tpu.matmul %47, %49, %cst_57 {dimension_numbers = #tpu.dot_dimension_numbers<[1], [0], [0], [1], [0, 0, 1, 1], [], []>} : vector<8x16xbf16>, vector<16x16xbf16>, vector<8x16xf32> -> vector<8x16xf32>
    %c1_58 = arith.constant 1 : index
    %c0_59 = arith.constant 0 : index
    %51 = vector.load %arg11[%c1_58, %c0_59] : memref<10x16xf32, #tpu.memory_space<vmem>>, vector<8x16xf32>
    %52 = arith.truncf %51 : vector<8x16xf32> to vector<8x16xbf16>
    %c1_60 = arith.constant 1 : index
    %c0_61 = arith.constant 0 : index
    %c0_62 = arith.constant 0 : index
    %53 = vector.load %arg3[%c1_60, %c0_61, %c0_62] : memref<3x16x16xbf16, #tpu.memory_space<vmem>>, vector<1x16x16xbf16>
    %54 = vector.shape_cast %53 : vector<1x16x16xbf16> to vector<16x16xbf16>
    %cst_63 = arith.constant dense<0.000000e+00> : vector<8x16xf32>
    %55 = tpu.matmul %52, %54, %cst_63 {dimension_numbers = #tpu.dot_dimension_numbers<[1], [0], [0], [1], [0, 0, 1, 1], [], []>} : vector<8x16xbf16>, vector<16x16xbf16>, vector<8x16xf32> -> vector<8x16xf32>
    %56 = arith.addf %50, %55 : vector<8x16xf32>
    %c2_64 = arith.constant 2 : index
    %c0_65 = arith.constant 0 : index
    %57 = vector.load %arg11[%c2_64, %c0_65] : memref<10x16xf32, #tpu.memory_space<vmem>>, vector<8x16xf32>
    %58 = arith.truncf %57 : vector<8x16xf32> to vector<8x16xbf16>
    %c2_66 = arith.constant 2 : index
    %c0_67 = arith.constant 0 : index
    %c0_68 = arith.constant 0 : index
    %59 = vector.load %arg3[%c2_66, %c0_67, %c0_68] : memref<3x16x16xbf16, #tpu.memory_space<vmem>>, vector<1x16x16xbf16>
    %60 = vector.shape_cast %59 : vector<1x16x16xbf16> to vector<16x16xbf16>
    %cst_69 = arith.constant dense<0.000000e+00> : vector<8x16xf32>
    %61 = tpu.matmul %58, %60, %cst_69 {dimension_numbers = #tpu.dot_dimension_numbers<[1], [0], [0], [1], [0, 0, 1, 1], [], []>} : vector<8x16xbf16>, vector<16x16xbf16>, vector<8x16xf32> -> vector<8x16xf32>
    %62 = arith.addf %56, %61 : vector<8x16xf32>
    %63 = vector.broadcast %1 : vector<1x16xf32> to vector<8x16xf32>
    %64 = arith.addf %62, %63 : vector<8x16xf32>
    %cst_70 = arith.constant 0.000000e+00 : f32
    %65 = vector.broadcast %cst_70 : f32 to vector<8x16xf32>
    %66 = arith.maximumf %64, %65 : vector<8x16xf32>
    %c1_71 = arith.constant 1 : index
    %c0_72 = arith.constant 0 : index
    %67 = vector.load %arg12[%c1_71, %c0_72] : memref<10x16xf32, #tpu.memory_space<vmem>>, vector<8x16xf32>
    tpu.vector_store %arg12[%c1_71, %c0_72], %66 {strides = array<i32>} : memref<10x16xf32, #tpu.memory_space<vmem>>, vector<8x16xf32>,
    %c0_73 = arith.constant 0 : index
    %c0_74 = arith.constant 0 : index
    %68 = vector.load %arg12[%c0_73, %c0_74] : memref<10x16xf32, #tpu.memory_space<vmem>>, vector<8x16xf32>
    %69 = arith.truncf %68 : vector<8x16xf32> to vector<8x16xbf16>
    %c0_75 = arith.constant 0 : index
    %c0_76 = arith.constant 0 : index
    %c0_77 = arith.constant 0 : index
    %70 = vector.load %arg4[%c0_75, %c0_76, %c0_77] : memref<3x16x32xbf16, #tpu.memory_space<vmem>>, vector<1x16x32xbf16>
    %71 = vector.shape_cast %70 : vector<1x16x32xbf16> to vector<16x32xbf16>
    %cst_78 = arith.constant dense<0.000000e+00> : vector<8x32xf32>
    %72 = tpu.matmul %69, %71, %cst_78 {dimension_numbers = #tpu.dot_dimension_numbers<[1], [0], [0], [1], [0, 0, 1, 1], [], []>} : vector<8x16xbf16>, vector<16x32xbf16>, vector<8x32xf32> -> vector<8x32xf32>
    %c1_79 = arith.constant 1 : index
    %c0_80 = arith.constant 0 : index
    %73 = vector.load %arg12[%c1_79, %c0_80] : memref<10x16xf32, #tpu.memory_space<vmem>>, vector<8x16xf32>
    %74 = arith.truncf %73 : vector<8x16xf32> to vector<8x16xbf16>
    %c1_81 = arith.constant 1 : index
    %c0_82 = arith.constant 0 : index
    %c0_83 = arith.constant 0 : index
    %75 = vector.load %arg4[%c1_81, %c0_82, %c0_83] : memref<3x16x32xbf16, #tpu.memory_space<vmem>>, vector<1x16x32xbf16>
    %76 = vector.shape_cast %75 : vector<1x16x32xbf16> to vector<16x32xbf16>
    %cst_84 = arith.constant dense<0.000000e+00> : vector<8x32xf32>
    %77 = tpu.matmul %74, %76, %cst_84 {dimension_numbers = #tpu.dot_dimension_numbers<[1], [0], [0], [1], [0, 0, 1, 1], [], []>} : vector<8x16xbf16>, vector<16x32xbf16>, vector<8x32xf32> -> vector<8x32xf32>
    %78 = arith.addf %72, %77 : vector<8x32xf32>
    %c2_85 = arith.constant 2 : index
    %c0_86 = arith.constant 0 : index
    %79 = vector.load %arg12[%c2_85, %c0_86] : memref<10x16xf32, #tpu.memory_space<vmem>>, vector<8x16xf32>
    %80 = arith.truncf %79 : vector<8x16xf32> to vector<8x16xbf16>
    %c2_87 = arith.constant 2 : index
    %c0_88 = arith.constant 0 : index
    %c0_89 = arith.constant 0 : index
    %81 = vector.load %arg4[%c2_87, %c0_88, %c0_89] : memref<3x16x32xbf16, #tpu.memory_space<vmem>>, vector<1x16x32xbf16>
    %82 = vector.shape_cast %81 : vector<1x16x32xbf16> to vector<16x32xbf16>
    %cst_90 = arith.constant dense<0.000000e+00> : vector<8x32xf32>
    %83 = tpu.matmul %80, %82, %cst_90 {dimension_numbers = #tpu.dot_dimension_numbers<[1], [0], [0], [1], [0, 0, 1, 1], [], []>} : vector<8x16xbf16>, vector<16x32xbf16>, vector<8x32xf32> -> vector<8x32xf32>
    %84 = arith.addf %78, %83 : vector<8x32xf32>
    %85 = vector.broadcast %2 : vector<1x32xf32> to vector<8x32xf32>
    %86 = arith.addf %84, %85 : vector<8x32xf32>
    %cst_91 = arith.constant 0.000000e+00 : f32
    %87 = vector.broadcast %cst_91 : f32 to vector<8x32xf32>
    %88 = arith.maximumf %86, %87 : vector<8x32xf32>
    %c1_92 = arith.constant 1 : index
    %c0_93 = arith.constant 0 : index
    %89 = vector.load %arg13[%c1_92, %c0_93] : memref<11x32xf32, #tpu.memory_space<vmem>>, vector<8x32xf32>
    tpu.vector_store %arg13[%c1_92, %c0_93], %88 {strides = array<i32>} : memref<11x32xf32, #tpu.memory_space<vmem>>, vector<8x32xf32>,
    %c0_94 = arith.constant 0 : index
    %c0_95 = arith.constant 0 : index
    %90 = tpu.strided_load %arg13[%c0_94, %c0_95] {strides = array<i32: 2, 1>} : memref<11x32xf32, #tpu.memory_space<vmem>>, vector<5x32xf32>
    %c1_96 = arith.constant 1 : index
    %c0_97 = arith.constant 0 : index
    %91 = tpu.strided_load %arg13[%c1_96, %c0_97] {strides = array<i32: 2, 1>} : memref<11x32xf32, #tpu.memory_space<vmem>>, vector<5x32xf32>
    %92 = arith.addf %90, %91 : vector<5x32xf32>
    %c2_98 = arith.constant 2 : index
    %c0_99 = arith.constant 0 : index
    %93 = tpu.strided_load %arg13[%c2_98, %c0_99] {strides = array<i32: 2, 1>} : memref<11x32xf32, #tpu.memory_space<vmem>>, vector<5x32xf32>
    %94 = arith.addf %92, %93 : vector<5x32xf32>
    %95 = vector.broadcast %3 : vector<5x1xf32> to vector<5x32xf32>
    %96 = arith.mulf %94, %95 : vector<5x32xf32>
    %97 = tpu.transpose %96, [1, 0] : vector<5x32xf32> -> vector<32x5xf32>
    %c0_100 = arith.constant 0 : index
    %c0_101 = arith.constant 0 : index
    %c0_102 = arith.constant 0 : index
    %98 = vector.load %arg9[%c0_100, %c0_101, %c0_102] : memref<2x32x5xf32, #tpu.memory_space<vmem>>, vector<1x32x5xf32>
    %99 = vector.shape_cast %98 : vector<1x32x5xf32> to vector<32x5xf32>
    %100 = vector.shape_cast %97 : vector<32x5xf32> to vector<1x32x5xf32>
    tpu.vector_store %arg9[%c0_100, %c0_101, %c0_102], %100 {strides = array<i32>} : memref<2x32x5xf32, #tpu.memory_space<vmem>>, vector<1x32x5xf32>,
    %c1_103 = arith.constant 1 : index
    %c0_104 = arith.constant 0 : index
    %c0_105 = arith.constant 0 : index
    %101 = vector.load %arg1[%c1_103, %c0_104, %c0_105] : memref<2x4x16xf32, #tpu.memory_space<vmem>>, vector<1x4x16xf32>
    %102 = vector.shape_cast %101 : vector<1x4x16xf32> to vector<4x16xf32>
    %103 = tpu.transpose %102, [1, 0] : vector<4x16xf32> -> vector<16x4xf32>
    %c1_106 = arith.constant 1 : index
    %c0_107 = arith.constant 0 : index
    %104 = vector.load %arg10[%c1_106, %c0_107] : memref<18x4xf32, #tpu.memory_space<vmem>>, vector<16x4xf32>
    tpu.vector_store %arg10[%c1_106, %c0_107], %103 {strides = array<i32>} : memref<18x4xf32, #tpu.memory_space<vmem>>, vector<16x4xf32>,
    %c0_108 = arith.constant 0 : index
    %c0_109 = arith.constant 0 : index
    %105 = tpu.strided_load %arg10[%c0_108, %c0_109] {strides = array<i32: 2, 1>} : memref<18x4xf32, #tpu.memory_space<vmem>>, vector<8x4xf32>
    %106 = arith.truncf %105 : vector<8x4xf32> to vector<8x4xbf16>
    %c0_110 = arith.constant 0 : index
    %c0_111 = arith.constant 0 : index
    %c0_112 = arith.constant 0 : index
    %107 = vector.load %arg2[%c0_110, %c0_111, %c0_112] : memref<3x4x16xbf16, #tpu.memory_space<vmem>>, vector<1x4x16xbf16>
    %108 = vector.shape_cast %107 : vector<1x4x16xbf16> to vector<4x16xbf16>
    %cst_113 = arith.constant dense<0.000000e+00> : vector<8x16xf32>
    %109 = tpu.matmul %106, %108, %cst_113 {dimension_numbers = #tpu.dot_dimension_numbers<[1], [0], [0], [1], [0, 0, 1, 1], [], []>} : vector<8x4xbf16>, vector<4x16xbf16>, vector<8x16xf32> -> vector<8x16xf32>
    %c1_114 = arith.constant 1 : index
    %c0_115 = arith.constant 0 : index
    %110 = tpu.strided_load %arg10[%c1_114, %c0_115] {strides = array<i32: 2, 1>} : memref<18x4xf32, #tpu.memory_space<vmem>>, vector<8x4xf32>
    %111 = arith.truncf %110 : vector<8x4xf32> to vector<8x4xbf16>
    %c1_116 = arith.constant 1 : index
    %c0_117 = arith.constant 0 : index
    %c0_118 = arith.constant 0 : index
    %112 = vector.load %arg2[%c1_116, %c0_117, %c0_118] : memref<3x4x16xbf16, #tpu.memory_space<vmem>>, vector<1x4x16xbf16>
    %113 = vector.shape_cast %112 : vector<1x4x16xbf16> to vector<4x16xbf16>
    %cst_119 = arith.constant dense<0.000000e+00> : vector<8x16xf32>
    %114 = tpu.matmul %111, %113, %cst_119 {dimension_numbers = #tpu.dot_dimension_numbers<[1], [0], [0], [1], [0, 0, 1, 1], [], []>} : vector<8x4xbf16>, vector<4x16xbf16>, vector<8x16xf32> -> vector<8x16xf32>
    %115 = arith.addf %109, %114 : vector<8x16xf32>
    %c2_120 = arith.constant 2 : index
    %c0_121 = arith.constant 0 : index
    %116 = tpu.strided_load %arg10[%c2_120, %c0_121] {strides = array<i32: 2, 1>} : memref<18x4xf32, #tpu.memory_space<vmem>>, vector<8x4xf32>
    %117 = arith.truncf %116 : vector<8x4xf32> to vector<8x4xbf16>
    %c2_122 = arith.constant 2 : index
    %c0_123 = arith.constant 0 : index
    %c0_124 = arith.constant 0 : index
    %118 = vector.load %arg2[%c2_122, %c0_123, %c0_124] : memref<3x4x16xbf16, #tpu.memory_space<vmem>>, vector<1x4x16xbf16>
    %119 = vector.shape_cast %118 : vector<1x4x16xbf16> to vector<4x16xbf16>
    %cst_125 = arith.constant dense<0.000000e+00> : vector<8x16xf32>
    %120 = tpu.matmul %117, %119, %cst_125 {dimension_numbers = #tpu.dot_dimension_numbers<[1], [0], [0], [1], [0, 0, 1, 1], [], []>} : vector<8x4xbf16>, vector<4x16xbf16>, vector<8x16xf32> -> vector<8x16xf32>
    %121 = arith.addf %115, %120 : vector<8x16xf32>
    %122 = vector.broadcast %0 : vector<1x16xf32> to vector<8x16xf32>
    %123 = arith.addf %121, %122 : vector<8x16xf32>
    %cst_126 = arith.constant 0.000000e+00 : f32
    %124 = vector.broadcast %cst_126 : f32 to vector<8x16xf32>
    %125 = arith.maximumf %123, %124 : vector<8x16xf32>
    %c1_127 = arith.constant 1 : index
    %c0_128 = arith.constant 0 : index
    %126 = vector.load %arg11[%c1_127, %c0_128] : memref<10x16xf32, #tpu.memory_space<vmem>>, vector<8x16xf32>
    tpu.vector_store %arg11[%c1_127, %c0_128], %125 {strides = array<i32>} : memref<10x16xf32, #tpu.memory_space<vmem>>, vector<8x16xf32>,
    %c0_129 = arith.constant 0 : index
    %c0_130 = arith.constant 0 : index
    %127 = vector.load %arg11[%c0_129, %c0_130] : memref<10x16xf32, #tpu.memory_space<vmem>>, vector<8x16xf32>
    %128 = arith.truncf %127 : vector<8x16xf32> to vector<8x16xbf16>
    %c0_131 = arith.constant 0 : index
    %c0_132 = arith.constant 0 : index
    %c0_133 = arith.constant 0 : index
    %129 = vector.load %arg3[%c0_131, %c0_132, %c0_133] : memref<3x16x16xbf16, #tpu.memory_space<vmem>>, vector<1x16x16xbf16>
    %130 = vector.shape_cast %129 : vector<1x16x16xbf16> to vector<16x16xbf16>
    %cst_134 = arith.constant dense<0.000000e+00> : vector<8x16xf32>
    %131 = tpu.matmul %128, %130, %cst_134 {dimension_numbers = #tpu.dot_dimension_numbers<[1], [0], [0], [1], [0, 0, 1, 1], [], []>} : vector<8x16xbf16>, vector<16x16xbf16>, vector<8x16xf32> -> vector<8x16xf32>
    %c1_135 = arith.constant 1 : index
    %c0_136 = arith.constant 0 : index
    %132 = vector.load %arg11[%c1_135, %c0_136] : memref<10x16xf32, #tpu.memory_space<vmem>>, vector<8x16xf32>
    %133 = arith.truncf %132 : vector<8x16xf32> to vector<8x16xbf16>
    %c1_137 = arith.constant 1 : index
    %c0_138 = arith.constant 0 : index
    %c0_139 = arith.constant 0 : index
    %134 = vector.load %arg3[%c1_137, %c0_138, %c0_139] : memref<3x16x16xbf16, #tpu.memory_space<vmem>>, vector<1x16x16xbf16>
    %135 = vector.shape_cast %134 : vector<1x16x16xbf16> to vector<16x16xbf16>
    %cst_140 = arith.constant dense<0.000000e+00> : vector<8x16xf32>
    %136 = tpu.matmul %133, %135, %cst_140 {dimension_numbers = #tpu.dot_dimension_numbers<[1], [0], [0], [1], [0, 0, 1, 1], [], []>} : vector<8x16xbf16>, vector<16x16xbf16>, vector<8x16xf32> -> vector<8x16xf32>
    %137 = arith.addf %131, %136 : vector<8x16xf32>
    %c2_141 = arith.constant 2 : index
    %c0_142 = arith.constant 0 : index
    %138 = vector.load %arg11[%c2_141, %c0_142] : memref<10x16xf32, #tpu.memory_space<vmem>>, vector<8x16xf32>
    %139 = arith.truncf %138 : vector<8x16xf32> to vector<8x16xbf16>
    %c2_143 = arith.constant 2 : index
    %c0_144 = arith.constant 0 : index
    %c0_145 = arith.constant 0 : index
    %140 = vector.load %arg3[%c2_143, %c0_144, %c0_145] : memref<3x16x16xbf16, #tpu.memory_space<vmem>>, vector<1x16x16xbf16>
    %141 = vector.shape_cast %140 : vector<1x16x16xbf16> to vector<16x16xbf16>
    %cst_146 = arith.constant dense<0.000000e+00> : vector<8x16xf32>
    %142 = tpu.matmul %139, %141, %cst_146 {dimension_numbers = #tpu.dot_dimension_numbers<[1], [0], [0], [1], [0, 0, 1, 1], [], []>} : vector<8x16xbf16>, vector<16x16xbf16>, vector<8x16xf32> -> vector<8x16xf32>
    %143 = arith.addf %137, %142 : vector<8x16xf32>
    %144 = vector.broadcast %1 : vector<1x16xf32> to vector<8x16xf32>
    %145 = arith.addf %143, %144 : vector<8x16xf32>
    %cst_147 = arith.constant 0.000000e+00 : f32
    %146 = vector.broadcast %cst_147 : f32 to vector<8x16xf32>
    %147 = arith.maximumf %145, %146 : vector<8x16xf32>
    %c1_148 = arith.constant 1 : index
    %c0_149 = arith.constant 0 : index
    %148 = vector.load %arg12[%c1_148, %c0_149] : memref<10x16xf32, #tpu.memory_space<vmem>>, vector<8x16xf32>
    tpu.vector_store %arg12[%c1_148, %c0_149], %147 {strides = array<i32>} : memref<10x16xf32, #tpu.memory_space<vmem>>, vector<8x16xf32>,
    %c0_150 = arith.constant 0 : index
    %c0_151 = arith.constant 0 : index
    %149 = vector.load %arg12[%c0_150, %c0_151] : memref<10x16xf32, #tpu.memory_space<vmem>>, vector<8x16xf32>
    %150 = arith.truncf %149 : vector<8x16xf32> to vector<8x16xbf16>
    %c0_152 = arith.constant 0 : index
    %c0_153 = arith.constant 0 : index
    %c0_154 = arith.constant 0 : index
    %151 = vector.load %arg4[%c0_152, %c0_153, %c0_154] : memref<3x16x32xbf16, #tpu.memory_space<vmem>>, vector<1x16x32xbf16>
    %152 = vector.shape_cast %151 : vector<1x16x32xbf16> to vector<16x32xbf16>
    %cst_155 = arith.constant dense<0.000000e+00> : vector<8x32xf32>
    %153 = tpu.matmul %150, %152, %cst_155 {dimension_numbers = #tpu.dot_dimension_numbers<[1], [0], [0], [1], [0, 0, 1, 1], [], []>} : vector<8x16xbf16>, vector<16x32xbf16>, vector<8x32xf32> -> vector<8x32xf32>
    %c1_156 = arith.constant 1 : index
    %c0_157 = arith.constant 0 : index
    %154 = vector.load %arg12[%c1_156, %c0_157] : memref<10x16xf32, #tpu.memory_space<vmem>>, vector<8x16xf32>
    %155 = arith.truncf %154 : vector<8x16xf32> to vector<8x16xbf16>
    %c1_158 = arith.constant 1 : index
    %c0_159 = arith.constant 0 : index
    %c0_160 = arith.constant 0 : index
    %156 = vector.load %arg4[%c1_158, %c0_159, %c0_160] : memref<3x16x32xbf16, #tpu.memory_space<vmem>>, vector<1x16x32xbf16>
    %157 = vector.shape_cast %156 : vector<1x16x32xbf16> to vector<16x32xbf16>
    %cst_161 = arith.constant dense<0.000000e+00> : vector<8x32xf32>
    %158 = tpu.matmul %155, %157, %cst_161 {dimension_numbers = #tpu.dot_dimension_numbers<[1], [0], [0], [1], [0, 0, 1, 1], [], []>} : vector<8x16xbf16>, vector<16x32xbf16>, vector<8x32xf32> -> vector<8x32xf32>
    %159 = arith.addf %153, %158 : vector<8x32xf32>
    %c2_162 = arith.constant 2 : index
    %c0_163 = arith.constant 0 : index
    %160 = vector.load %arg12[%c2_162, %c0_163] : memref<10x16xf32, #tpu.memory_space<vmem>>, vector<8x16xf32>
    %161 = arith.truncf %160 : vector<8x16xf32> to vector<8x16xbf16>
    %c2_164 = arith.constant 2 : index
    %c0_165 = arith.constant 0 : index
    %c0_166 = arith.constant 0 : index
    %162 = vector.load %arg4[%c2_164, %c0_165, %c0_166] : memref<3x16x32xbf16, #tpu.memory_space<vmem>>, vector<1x16x32xbf16>
    %163 = vector.shape_cast %162 : vector<1x16x32xbf16> to vector<16x32xbf16>
    %cst_167 = arith.constant dense<0.000000e+00> : vector<8x32xf32>
    %164 = tpu.matmul %161, %163, %cst_167 {dimension_numbers = #tpu.dot_dimension_numbers<[1], [0], [0], [1], [0, 0, 1, 1], [], []>} : vector<8x16xbf16>, vector<16x32xbf16>, vector<8x32xf32> -> vector<8x32xf32>
    %165 = arith.addf %159, %164 : vector<8x32xf32>
    %166 = vector.broadcast %2 : vector<1x32xf32> to vector<8x32xf32>
    %167 = arith.addf %165, %166 : vector<8x32xf32>
    %cst_168 = arith.constant 0.000000e+00 : f32
    %168 = vector.broadcast %cst_168 : f32 to vector<8x32xf32>
    %169 = arith.maximumf %167, %168 : vector<8x32xf32>
    %c1_169 = arith.constant 1 : index
    %c0_170 = arith.constant 0 : index
    %170 = vector.load %arg13[%c1_169, %c0_170] : memref<11x32xf32, #tpu.memory_space<vmem>>, vector<8x32xf32>
    tpu.vector_store %arg13[%c1_169, %c0_170], %169 {strides = array<i32>} : memref<11x32xf32, #tpu.memory_space<vmem>>, vector<8x32xf32>,
    %c0_171 = arith.constant 0 : index
    %c0_172 = arith.constant 0 : index
    %171 = tpu.strided_load %arg13[%c0_171, %c0_172] {strides = array<i32: 2, 1>} : memref<11x32xf32, #tpu.memory_space<vmem>>, vector<5x32xf32>
    %c1_173 = arith.constant 1 : index
    %c0_174 = arith.constant 0 : index
    %172 = tpu.strided_load %arg13[%c1_173, %c0_174] {strides = array<i32: 2, 1>} : memref<11x32xf32, #tpu.memory_space<vmem>>, vector<5x32xf32>
    %173 = arith.addf %171, %172 : vector<5x32xf32>
    %c2_175 = arith.constant 2 : index
    %c0_176 = arith.constant 0 : index
    %174 = tpu.strided_load %arg13[%c2_175, %c0_176] {strides = array<i32: 2, 1>} : memref<11x32xf32, #tpu.memory_space<vmem>>, vector<5x32xf32>
    %175 = arith.addf %173, %174 : vector<5x32xf32>
    %176 = vector.broadcast %3 : vector<5x1xf32> to vector<5x32xf32>
    %177 = arith.mulf %175, %176 : vector<5x32xf32>
    %178 = tpu.transpose %177, [1, 0] : vector<5x32xf32> -> vector<32x5xf32>
    %c1_177 = arith.constant 1 : index
    %c0_178 = arith.constant 0 : index
    %c0_179 = arith.constant 0 : index
    %179 = vector.load %arg9[%c1_177, %c0_178, %c0_179] : memref<2x32x5xf32, #tpu.memory_space<vmem>>, vector<1x32x5xf32>
    %180 = vector.shape_cast %179 : vector<1x32x5xf32> to vector<32x5xf32>
    %181 = vector.shape_cast %178 : vector<32x5xf32> to vector<1x32x5xf32>
    tpu.vector_store %arg9[%c1_177, %c0_178, %c0_179], %181 {strides = array<i32>} : memref<2x32x5xf32, #tpu.memory_space<vmem>>, vector<1x32x5xf32>,
    return
  }
  func.func @transform_0(%arg0: i32) -> (i32, i32, i32) {
    %c0_i32 = arith.constant 0 : i32
    %c0_i32_0 = arith.constant 0 : i32
    %c0_i32_1 = arith.constant 0 : i32
    return %arg0, %c0_i32, %c0_i32_0 : i32, i32, i32
  }
  func.func @transform_1(%arg0: i32) -> (i32, i32, i32) {
    %c0_i32 = arith.constant 0 : i32
    %c0_i32_0 = arith.constant 0 : i32
    %c0_i32_1 = arith.constant 0 : i32
    %c0_i32_2 = arith.constant 0 : i32
    return %c0_i32, %c0_i32_0, %c0_i32_1 : i32, i32, i32
  }
  func.func @transform_2(%arg0: i32) -> (i32, i32, i32) {
    %c0_i32 = arith.constant 0 : i32
    %c0_i32_0 = arith.constant 0 : i32
    %c0_i32_1 = arith.constant 0 : i32
    %c0_i32_2 = arith.constant 0 : i32
    return %c0_i32, %c0_i32_0, %c0_i32_1 : i32, i32, i32
  }
  func.func @transform_3(%arg0: i32) -> (i32, i32, i32) {
    %c0_i32 = arith.constant 0 : i32
    %c0_i32_0 = arith.constant 0 : i32
    %c0_i32_1 = arith.constant 0 : i32
    %c0_i32_2 = arith.constant 0 : i32
    return %c0_i32, %c0_i32_0, %c0_i32_1 : i32, i32, i32
  }
  func.func @transform_4(%arg0: i32) -> (i32, i32) {
    %c0_i32 = arith.constant 0 : i32
    %c0_i32_0 = arith.constant 0 : i32
    %c0_i32_1 = arith.constant 0 : i32
    return %c0_i32, %c0_i32_0 : i32, i32
  }
  func.func @transform_5(%arg0: i32) -> (i32, i32) {
    %c0_i32 = arith.constant 0 : i32
    %c0_i32_0 = arith.constant 0 : i32
    %c0_i32_1 = arith.constant 0 : i32
    return %c0_i32, %c0_i32_0 : i32, i32
  }
  func.func @transform_6(%arg0: i32) -> (i32, i32) {
    %c0_i32 = arith.constant 0 : i32
    %c0_i32_0 = arith.constant 0 : i32
    %c0_i32_1 = arith.constant 0 : i32
    return %c0_i32, %c0_i32_0 : i32, i32
  }
  func.func @transform_7(%arg0: i32) -> (i32, i32) {
    %c0_i32 = arith.constant 0 : i32
    %c0_i32_0 = arith.constant 0 : i32
    %c0_i32_1 = arith.constant 0 : i32
    return %c0_i32, %c0_i32_0 : i32, i32
  }
  func.func @transform_8(%arg0: i32) -> (i32, i32, i32) {
    %c0_i32 = arith.constant 0 : i32
    %c0_i32_0 = arith.constant 0 : i32
    %c0_i32_1 = arith.constant 0 : i32
    return %arg0, %c0_i32, %c0_i32_0 : i32, i32, i32
  }
}

</mosaic_0001>

<bundles_post_ra>
// kernel: tpu_custom_call.1
= control target key start
LH: loop header
LB: loop body
LE: loop exit
PB: predicated region body
PF: predicated region fallthrough
CT: control target
= control target key end

     0   :  { %13 = vsyncpa [#allocation7], 0  ;;  %s1738_s0 = inlined_call_operand.vmem [shape: f32[2,4,16], index: 0, kind: input, shape index: {}]   ;;  %s1739_s1 = inlined_call_operand.hbm [shape: bf16[3,4,16], index: 1, kind: input, shape index: {}]   ;;  %s1740_s2 = inlined_call_operand.hbm [shape: bf16[3,16,16], index: 2, kind: input, shape index: {}]   ;;  %s1741_s3 = inlined_call_operand.hbm [shape: bf16[3,16,32], index: 3, kind: input, shape index: {}]   ;;  %s1742_s4 = inlined_call_operand.vmem [shape: f32[1,16], index: 4, kind: input, shape index: {}]   ;;  %s1743_s5 = inlined_call_operand.vmem [shape: f32[1,16], index: 5, kind: input, shape index: {}]   ;;  %s1744_s6 = inlined_call_operand.vmem [shape: f32[1,32], index: 6, kind: input, shape index: {}]   ;;  %s1745_s7 = inlined_call_operand.vmem [shape: f32[5,1], index: 7, kind: input, shape index: {}]   ;;  %s1746_s8 = inlined_call_operand.vmem [shape: f32[2,32,5], index: 8, kind: output, shape index: {}]  }
   0x1   :  { %14 = vsyncpa [#allocation9], 0  ;;  %s1511_s27 = smov [#allocation8]  }
   0x2   :  { %s34_s28 = sshll.u32 %s1511_s27, 4  ;;  %s35_s28 = int_to_ptr.vmem [resolvable:$true] %s34_s28 }
   0x3   :  { %s1455_s29 = scalar_lea.vmem %s35_s28, 384  ;;  %p1460_p1 = scmp.lt.s32.totalorder %s35_s28, %s35_s28 }
   0x4   :  { %p1456_p0 = scmp.ne.s32.totalorder %s35_s28, %s1455_s29  ;;  %p1461_p2 = scmp.lt.s32.totalorder %s1455_s29, %s1455_s29 }
   0x6   :  { %p1462_p3 = por %p1461_p2, %p1460_p1 }
   0x8   :  { %p1463_p4 = pnand %p1462_p3, %p1456_p0 }
   0xa   :  { %1466 = shalt.err (!%p1463_p4)
}
   0xb   :  { %s1512_s30 = smov 64   ;;  %s1513_s9 = smov 4  }
   0xc   :  { %40 = dma.hbm_to_vmem [thread:$0]  %s1740_s2, 384, %s35_s28, [#allocation9], %s1512_s30, %s1512_s30, %s1513_s9  }
   0xd   :  { %s1514_s12 = smov [#allocation6]  }
   0xe   :  { %s22_s13 = sshll.u32 %s1514_s12, 4  ;;  %s23_s13 = int_to_ptr.vmem [resolvable:$true] %s22_s13 }
   0xf   :  { %s1475_s14 = scalar_lea.vmem %s23_s13, 96  ;;  %p1480_p6 = scmp.lt.s32.totalorder %s23_s13, %s23_s13 }
  0x10   :  { %p1476_p5 = scmp.ne.s32.totalorder %s23_s13, %s1475_s14  ;;  %p1481_p7 = scmp.lt.s32.totalorder %s1475_s14, %s1475_s14 }
  0x12   :  { %p1482_p8 = por %p1481_p7, %p1480_p6 }
  0x14   :  { %p1483_p9 = pnand %p1482_p8, %p1476_p5 }
  0x16   :  { %1486 = shalt.err (!%p1483_p9)
}
  0x17   :  { %s1515_s15 = smov 32   ;;  %s1516_s16 = smov 2  }
  0x18   :  { %28 = dma.hbm_to_vmem [thread:$0]  %s1739_s1, 96, %s23_s13, [#allocation7], %s1515_s15, %s1515_s15, %s1516_s16  }
  0x19   :  { %s1517_s19 = smov [#allocation10]  }
  0x1a   :  { %s46_s20 = sshll.u32 %s1517_s19, 4  ;;  %s47_s20 = int_to_ptr.vmem [resolvable:$true] %s46_s20 }
  0x1b   :  { %s1495_s2 = scalar_lea.vmem %s47_s20, 384  ;;  %p1500_p11 = scmp.lt.s32.totalorder %s47_s20, %s47_s20 }
  0x1c   :  { %p1496_p10 = scmp.ne.s32.totalorder %s47_s20, %s1495_s2  ;;  %p1501_p12 = scmp.lt.s32.totalorder %s1495_s2, %s1495_s2 }
  0x1e   :  { %p1502_p13 = por %p1501_p12, %p1500_p11 }
  0x20   :  { %p1503_p0 = pnand %p1502_p13, %p1496_p10 }
  0x22   :  { %1506 = shalt.err (!%p1503_p0)
}
  0x23   :  { %52 = dma.hbm_to_vmem [thread:$0]  %s1741_s3, 384, %s47_s20, [#allocation9], %s1512_s30, %s1512_s30, %s1513_s9  }
  0x24   :  { %1507 = dma.done.wait [#allocation7], 96  }
  0x25   :  { %1508 = vsyncadd [#allocation7], 4294967200 }
  0x26   :  { %1509 = dma.done.wait [#allocation9], 768  }
  0x27   :  { %1510 = vsyncadd [#allocation9], 4294966528  ;;  %v87_v0 = vld [vmem:[%s1738_s0] sm:$0xf]  ;;  %vm75_vm0 = vcmask 24576   ;;  %v1518_v1 = vmov 0.0  }
  0x28   :  { %88 = vxpose.xlu0.b32.start.end [1/1] (short) (narrow) %v87_v0, 16  ;;  %1315 = vmatprep.subr.bf16.mxu0 %v1518_v1  ;;  %v130_v2 = vld [vmem:[#allocation6 + $0x2] sm:$0x3]  ;;  %vm134_vm1 = vcmask 1041408   ;;  %v125_v3 = vld [vmem:[#allocation6] sm:$0x3] }
  0x29   :  { %1321 = vmatprep.subr.bf16.mxu1 %v1518_v1  ;;  %76 = vst.msk [vmem:[#allocation2] sm:$0x1] %vm75_vm0, %v1518_v1  ;;  %v136_v4 = vsel %vm134_vm1, %v130_v2, 0  ;;  %v182_v5 = vsel %vm134_vm1, %v125_v3, 0  ;;  %vm1519_vm2 = vmmov 0   ;;  %vm120_vm3 = vcmask 31744  }
  0x2a   :  { %1317 = vmatprep.mubr.msk.bf16.mxu0 %vm1519_vm2, %v1518_v1  ;;  %1323 = vmatprep.mubr.msk.bf16.mxu1 %vm1519_vm2, %v1518_v1  ;;  %v228_v8 = vld [vmem:[#allocation6 + $0x4] sm:$0x3]  ;;  %vm78_vm4 = vcmask 122880   ;;  %v1435_v16 = vld [vmem:[#allocation8 + $0x8] sm:$0xff]   ;;  %v1436_v17 = vld [vmem:[#allocation8] sm:$0xff]   ;;  %vm284_vm5 = vcmask 130048  }
  0x2b   :  { %1316 = vmatpush3.bf16.msra.mxu0 %v136_v4  ;;  %1322 = vmatpush3.bf16.msra.mxu1 %v182_v5  ;;  %v233_v13 = vsel %vm134_vm1, %v228_v8, 0  ;;  %79 = vst.msk [vmem:[#allocation3] sm:$0x1] %vm78_vm4, %v1518_v1  ;;  %80 = vst.msk [vmem:[#allocation3 + $0x9] sm:$0x1] %vm78_vm4, %v1518_v1  ;;  %v1437_v38 = vld [vmem:[#allocation8 + $0x10] sm:$0xff]  }
  0x2c   :  { %1327 = vmatprep.subr.bf16.mxu0 %v1518_v1  ;;  %1333 = vmatprep.subr.bf16.mxu1 %v1518_v1  ;;  %81 = vst.msk [vmem:[#allocation4] sm:$0x1] %vm78_vm4, %v1518_v1  ;;  %82 = vst.msk [vmem:[#allocation4 + $0x9] sm:$0x1] %vm78_vm4, %v1518_v1  ;;  %v1259_v18 = vld [vmem:[%s1738_s0 + $0x4] sm:$0xf] }
  0x2d   :  { %681 = vxpose.xlu0.b32.start.end [1/1] (short) (narrow) %v1259_v18, 16  ;;  %v1614_v28 = vld [vmem:[%s1742_s4] ss:$0 sm:$0xff]  ;;  %v1438_v44 = vld [vmem:[#allocation10 + $0x8] sm:$0xff]   ;;  %v1439_v45 = vld [vmem:[#allocation10] sm:$0xff]   ;;  %v1520_v48 = vmov 0  }
  0x2e   :  { %v74_v47 = vld [vmem:[%s1745_s7] sm:$0x1f]  ;;  %1433 = vset.pattern.permute.xlu1 %v1520_v48  ;;  %v720_v3 = vld [vmem:[#allocation6 + $0x2] sm:$0x3]  ;;  %vm83_vm6 = vcmask 253952   ;;  %vm85_vm7 = vcmask 254976  }
  0x2f   :  { %638 = vperm.xlu1 %1433, %v74_v47   ;;  %v1639_v58 = vld [vmem:[%s1743_s5] ss:$0 sm:$0xff]  ;;  %84 = vst.msk [vmem:[#allocation5] sm:$0x1] %vm83_vm6, %v1518_v1  ;;  %vm627_vm8 = vcmask 261120   ;;  %vm674_vm9 = vcmask 39936  }
  0x30   :  { %86 = vst.msk [vmem:[#allocation5 + $0x9] sm:$0x3] %vm85_vm7, %v1518_v1 }
  0xa4   :  { %v104_v6 = vpop.trf.xlu0 }
  0xa5   :  { %121 = vst.msk [vmem:[#allocation2 + $0x1] sm:$0xff] %vm120_vm3, %v104_v6  ;;  %v1440_v6 = vld [vmem:[#allocation10 + $0x10] sm:$0xff]  }
  0xa8   :  { %v105_v7 = vpop.trf.xlu0 }
  0xa9   :  { %122 = vst.msk [vmem:[#allocation2 + $0x9] sm:$0xff] %vm120_vm3, %v105_v7 }
  0xac   :  { %v697_v43 = vpop.trf.xlu0 }
  0xb0   :  { %v127_v9 = vld [vmem:[#allocation2 + $0x1] ss:$2 sm:$0xff]  ;;  %v123_v10 = vld [vmem:[#allocation2] ss:$2 sm:$0xff]  ;;  %v698_v46 = vpop.trf.xlu0 }
  0xb1   :  { %v128_v11 = vpack.c.bf16 %v127_v9, %v127_v9  ;;  %v124_v12 = vpack.c.bf16 %v123_v10, %v123_v10  ;;  %v225_v14 = vld [vmem:[#allocation2 + $0x2] ss:$2 sm:$0xff]  ;;  %v725_v9 = vsel %vm134_vm1, %v720_v3, 0 }
  0xb2   :  { %v226_v15 = vpack.c.bf16 %v225_v14, %v225_v14  ;;  %713 = vst.msk [vmem:[#allocation2 + $0x1] sm:$0xff] %vm120_vm3, %v697_v43  ;;  %714 = vst.msk [vmem:[#allocation2 + $0x9] sm:$0xff] %vm120_vm3, %v698_v46 }
  0xb3   :  { %1318 = vmatmul.mubr.msk.bf16.vlgmr.msra.gmra.mxu0 %vm120_vm3, %v128_v11  ;;  %1324 = vmatmul.mubr.msk.bf16.vlgmr.msra.gmra.mxu1 %vm120_vm3, %v124_v12  ;;  %v717_v12 = vld [vmem:[#allocation6] sm:$0x3] }
  0xb4   :  { %1328 = vmatpush3.bf16.msra.mxu0 %v233_v13  ;;  %1329 = vmatprep.mubr.msk.bf16.mxu0 %vm1519_vm2, %v1518_v1  ;;  %v815_v13 = vld [vmem:[#allocation6 + $0x4] sm:$0x3] }
  0xb5   :  { %1339 = vmatprep.subr.bf16.mxu0 %v1518_v1  ;;  %1335 = vmatprep.mubr.msk.bf16.mxu1 %vm1519_vm2, %v1518_v1 }
  0xb6   :  { %1334 = vmatpush3.bf16.msra.mxu1 %v1435_v16  ;;  %v771_v16 = vsel %vm134_vm1, %v717_v12, 0 }
  0xb7   :  { %1345 = vmatprep.subr.bf16.mxu1 %v1518_v1 }
  0xb9   :  { %v718_v10 = vld [vmem:[#allocation2 + $0x1] ss:$2 sm:$0xff]  ;;  %v715_v18 = vld [vmem:[#allocation2] ss:$2 sm:$0xff] }
  0xbb   :  { %1330 = vmatmul.mubr.msk.bf16.vlgmr.msra.gmra.mxu0 %vm120_vm3, %v226_v15  ;;  %v719_v15 = vpack.c.bf16 %v718_v10, %v718_v10  ;;  %v1444_v10 = vld [vmem:[#allocation10 + $0x8] sm:$0xff]  }
  0xbc   :  { %1341 = vmatprep.mubr.msk.bf16.mxu0 %vm1519_vm2, %v1518_v1  ;;  %1340 = vmatpush3.bf16.msra.mxu0 %v1436_v17  ;;  %v820_v17 = vsel %vm134_vm1, %v815_v13, 0 }
  0xbd   :  { %1351 = vmatprep.subr.bf16.mxu0 %v1518_v1 }
 0x173   :  { %v172_v19 = vpop.f32.mrf.mxu0  ;;  %v218_v20 = vpop.f32.mrf.mxu1 }
 0x174   :  { %v219_v27 = vadd.f32 %v218_v20, %v172_v19  ;;  %v813_v19 = vld [vmem:[#allocation2 + $0x2] ss:$2 sm:$0xff]  ;;  %v716_v20 = vpack.c.bf16 %v715_v18, %v715_v18 }
 0x175   :  { %v1319_v21 = vpop.f32.mrf.mxu0  ;;  %v1325_v22 = vpop.f32.mrf.mxu1 }
 0x176   :  { %v814_v21 = vpack.c.bf16 %v813_v19, %v813_v19  ;;  %v1441_v22 = vld [vmem:[#allocation8 + $0x8] sm:$0xff]  }
 0x177   :  { %v175_v23 = vpop.f32.mrf.mxu0  ;;  %v221_v24 = vpop.f32.mrf.mxu1 }
 0x178   :  { %v1442_v23 = vld [vmem:[#allocation8] sm:$0xff]  }
 0x179   :  { %v1320_v25 = vpop.f32.mrf.mxu0  ;;  %v1326_v26 = vpop.f32.mrf.mxu1 }
 0x17b   :  { %v269_v29 = vpop.f32.mrf.mxu0 }
 0x17c   :  { %v275_v30 = vadd.f32 %v269_v29, %v219_v27 }
 0x17d   :  { %v1331_v31 = vpop.f32.mrf.mxu0 }
 0x17e   :  { %v282_v32 = vadd.f32 %v1614_v28, %v275_v30 }
 0x17f   :  { %v272_v33 = vpop.f32.mrf.mxu0 }
 0x180   :  { %v283_v34 = vmax.f32 %v282_v32, 0.0 }
 0x181   :  { %v1332_v35 = vpop.f32.mrf.mxu0 }
 0x182   :  { %285 = vst.msk [vmem:[#allocation3 + $0x1] sm:$0xff] %vm284_vm5, %v283_v34  ;;  %v1675_v34 = vld [vmem:[%s1744_s6] ss:$0 sm:$0xff] }
 0x189   :  { %v290_v36 = vld [vmem:[#allocation3 + $0x1] sm:$0xff] }
 0x18a   :  { %v286_v37 = vld [vmem:[#allocation3] sm:$0xff]  ;;  %v291_v39 = vpack.c.bf16 %v290_v36, %v290_v36 }
 0x18b   :  { %v287_v40 = vpack.c.bf16 %v286_v37, %v286_v37  ;;  %v393_v41 = vld [vmem:[#allocation3 + $0x2] sm:$0xff] }
 0x18c   :  { %1336 = vmatmul.mubr.msk.bf16.vlgmr.msra.gmra.mxu1 %vm284_vm5, %v291_v39  ;;  %v394_v42 = vpack.c.bf16 %v393_v41, %v393_v41 }
 0x18d   :  { %1342 = vmatmul.mubr.msk.bf16.vlgmr.msra.gmra.mxu0 %vm284_vm5, %v287_v40  ;;  %1346 = vmatpush3.bf16.msra.mxu1 %v1437_v38 }
 0x18e   :  { %1347 = vmatprep.mubr.msk.bf16.mxu1 %vm1519_vm2, %v1518_v1  ;;  %1357 = vmatprep.subr.bf16.mxu1 %v1518_v1 }
 0x18f   :  { %1353 = vmatprep.mubr.msk.bf16.mxu0 %vm1519_vm2, %v1518_v1  ;;  %1352 = vmatpush3.bf16.msra.mxu0 %v1438_v44 }
 0x190   :  { %1363 = vmatprep.subr.bf16.mxu0 %v1518_v1 }
 0x194   :  { %1348 = vmatmul.mubr.msk.bf16.vlgmr.msra.gmra.mxu1 %vm284_vm5, %v394_v42 }
 0x195   :  { %1359 = vmatprep.mubr.msk.bf16.mxu1 %vm1519_vm2, %v1518_v1  ;;  %1358 = vmatpush3.bf16.msra.mxu1 %v1439_v45 }
 0x196   :  { %1369 = vmatprep.subr.bf16.mxu1 %v1518_v1 }
 0x24c   :  { %v338_v49 = vpop.f32.mrf.mxu1 }
 0x24d   :  { %v387_v50 = vpop.f32.mrf.mxu0 }
 0x24e   :  { %v1337_v51 = vpop.f32.mrf.mxu1  ;;  %v388_v57 = vadd.f32 %v387_v50, %v338_v49 }
 0x24f   :  { %v1343_v52 = vpop.f32.mrf.mxu0 }
 0x250   :  { %v341_v53 = vpop.f32.mrf.mxu1 }
 0x251   :  { %v390_v54 = vpop.f32.mrf.mxu0 }
 0x252   :  { %v1338_v55 = vpop.f32.mrf.mxu1 }
 0x253   :  { %v1344_v56 = vpop.f32.mrf.mxu0 }
 0x254   :  { %v441_v59 = vpop.f32.mrf.mxu1 }
 0x255   :  { %v447_v60 = vadd.f32 %v441_v59, %v388_v57 }
 0x256   :  { %v1349_v61 = vpop.f32.mrf.mxu1 }
 0x257   :  { %v454_v62 = vadd.f32 %v1639_v58, %v447_v60 }
 0x258   :  { %v444_v63 = vpop.f32.mrf.mxu1 }
 0x259   :  { %v455_v0 = vmax.f32 %v454_v62, 0.0  ;;  %v1680_v63 = vpop.permute.xlu1 %638 }
 0x25a   :  { %v1350_v2 = vpop.f32.mrf.mxu1 }
 0x25b   :  { %456 = vst.msk [vmem:[#allocation4 + $0x1] sm:$0xff] %vm284_vm5, %v455_v0 }
 0x262   :  { %v461_v4 = vld [vmem:[#allocation4 + $0x1] sm:$0xff] }
 0x263   :  { %v457_v5 = vld [vmem:[#allocation4] sm:$0xff]  ;;  %v462_v7 = vpack.c.bf16 %v461_v4, %v461_v4 }
 0x264   :  { %v458_v8 = vpack.c.bf16 %v457_v5, %v457_v5  ;;  %v564_v11 = vld [vmem:[#allocation4 + $0x2] sm:$0xff] }
 0x265   :  { %1354 = vmatmul.mubr.msk.bf16.vlgmr.msra.gmra.mxu0 %vm284_vm5, %v462_v7  ;;  %v565_v14 = vpack.c.bf16 %v564_v11, %v564_v11  ;;  %v1445_v11 = vld [vmem:[#allocation10] sm:$0xff]  }
 0x266   :  { %1360 = vmatmul.mubr.msk.bf16.vlgmr.msra.gmra.mxu1 %vm284_vm5, %v458_v8  ;;  %1364 = vmatpush3.bf16.msra.mxu0 %v1440_v6  ;;  %v1443_v6 = vld [vmem:[#allocation8 + $0x10] sm:$0xff]  }
 0x267   :  { %1370 = vmatpush3.bf16.msra.mxu1 %v725_v9  ;;  %1365 = vmatprep.mubr.msk.bf16.mxu0 %vm1519_vm2, %v1518_v1 }
 0x268   :  { %1371 = vmatprep.mubr.msk.bf16.mxu1 %vm1519_vm2, %v1518_v1  ;;  %1375 = vmatprep.subr.bf16.mxu0 %v1518_v1 }
 0x269   :  { %1381 = vmatprep.subr.bf16.mxu1 %v1518_v1 }
 0x26d   :  { %1366 = vmatmul.mubr.msk.bf16.vlgmr.msra.gmra.mxu0 %vm284_vm5, %v565_v14 }
 0x26e   :  { %1372 = vmatmul.mubr.msk.bf16.vlgmr.msra.gmra.mxu1 %vm120_vm3, %v719_v15  ;;  %1376 = vmatpush3.bf16.msra.mxu0 %v771_v16 }
 0x26f   :  { %1382 = vmatpush3.bf16.msra.mxu1 %v820_v17  ;;  %1377 = vmatprep.mubr.msk.bf16.mxu0 %vm1519_vm2, %v1518_v1 }
 0x270   :  { %1383 = vmatprep.mubr.msk.bf16.mxu1 %vm1519_vm2, %v1518_v1  ;;  %1387 = vmatprep.subr.bf16.mxu0 %v1518_v1 }
 0x271   :  { %1393 = vmatprep.subr.bf16.mxu1 %v1518_v1 }
 0x275   :  { %1378 = vmatmul.mubr.msk.bf16.vlgmr.msra.gmra.mxu0 %vm120_vm3, %v716_v20 }
 0x276   :  { %1384 = vmatmul.mubr.msk.bf16.vlgmr.msra.gmra.mxu1 %vm120_vm3, %v814_v21  ;;  %1389 = vmatprep.mubr.msk.bf16.mxu0 %vm1519_vm2, %v1518_v1 }
 0x277   :  { %1395 = vmatprep.mubr.msk.bf16.mxu1 %vm1519_vm2, %v1518_v1  ;;  %1388 = vmatpush3.bf16.msra.mxu0 %v1441_v22 }
 0x278   :  { %1399 = vmatprep.subr.bf16.mxu0 %v1518_v1  ;;  %1394 = vmatpush3.bf16.msra.mxu1 %v1442_v23 }
 0x279   :  { %1405 = vmatprep.subr.bf16.mxu1 %v1518_v1 }
 0x325   :  { %v509_v24 = vpop.f32.mrf.mxu0 }
 0x326   :  { %v558_v25 = vpop.f32.mrf.mxu1 }
 0x327   :  { %v1355_v26 = vpop.f32.mrf.mxu0  ;;  %v559_v33 = vadd.f32 %v558_v25, %v509_v24 }
 0x328   :  { %v1361_v27 = vpop.f32.mrf.mxu1 }
 0x329   :  { %v512_v29 = vpop.f32.mrf.mxu0 }
 0x32a   :  { %v561_v30 = vpop.f32.mrf.mxu1 }
 0x32b   :  { %v1356_v31 = vpop.f32.mrf.mxu0 }
 0x32c   :  { %v1362_v32 = vpop.f32.mrf.mxu1  ;;  %v1446_v31 = vld [vmem:[#allocation10 + $0x10] sm:$0xff]  }
 0x32d   :  { %v612_v35 = vpop.f32.mrf.mxu0 }
 0x32e   :  { %v761_v36 = vpop.f32.mrf.mxu1  ;;  %v618_v37 = vadd.f32 %v612_v35, %v559_v33 }
 0x32f   :  { %v1367_v38 = vpop.f32.mrf.mxu0 }
 0x330   :  { %v1373_v39 = vpop.f32.mrf.mxu1  ;;  %v625_v40 = vadd.f32 %v1675_v34, %v618_v37 }
 0x331   :  { %v615_v41 = vpop.f32.mrf.mxu0 }
 0x332   :  { %v764_v42 = vpop.f32.mrf.mxu1  ;;  %v626_v43 = vmax.f32 %v625_v40, 0.0 }
 0x333   :  { %v1368_v44 = vpop.f32.mrf.mxu0 }
 0x334   :  { %v1374_v45 = vpop.f32.mrf.mxu1  ;;  %628 = vst.msk [vmem:[#allocation5 + $0x1] sm:$0xff] %vm627_vm8, %v626_v43 }
 0x335   :  { %v807_v46 = vpop.f32.mrf.mxu0 }
 0x336   :  { %v856_v47 = vpop.f32.mrf.mxu1  ;;  %v808_v49 = vadd.f32 %v807_v46, %v761_v36 }
 0x337   :  { %v1379_v50 = vpop.f32.mrf.mxu0 }
 0x338   :  { %v1385_v51 = vpop.f32.mrf.mxu1  ;;  %v862_v52 = vadd.f32 %v856_v47, %v808_v49 }
 0x339   :  { %v810_v53 = vpop.f32.mrf.mxu0 }
 0x33a   :  { %v859_v54 = vpop.f32.mrf.mxu1  ;;  %v863_v55 = vadd.f32 %v1614_v28, %v862_v52 }
 0x33b   :  { %v1380_v56 = vpop.f32.mrf.mxu0  ;;  %v629_v59 = vld [vmem:[#allocation5] ss:$2 sm:$0x1f]  ;;  %v631_v60 = vld [vmem:[#allocation5 + $0x1] ss:$2 sm:$0x1f] }
 0x33c   :  { %v1386_v57 = vpop.f32.mrf.mxu1  ;;  %v864_v61 = vmax.f32 %v863_v55, 0.0  ;;  %v632_v62 = vadd.f32 %v631_v60, %v629_v59  ;;  %v634_v0 = vld [vmem:[#allocation5 + $0x2] ss:$2 sm:$0x1f] }
 0x33e   :  { %865 = vst.msk [vmem:[#allocation3 + $0x1] sm:$0xff] %vm284_vm5, %v864_v61  ;;  %v635_v2 = vadd.f32 %v634_v0, %v632_v62 }
 0x340   :  { %v641_v3 = vmul.f32 %v1680_v63, %v635_v2 }
 0x342   :  { %642 = vxpose.xlu1.b32.start.end [1/1] (short) (narrow) %v641_v3, 32 }
 0x345   :  { %v870_v4 = vld [vmem:[#allocation3 + $0x1] sm:$0xff] }
 0x346   :  { %v866_v5 = vld [vmem:[#allocation3] sm:$0xff]  ;;  %v871_v7 = vpack.c.bf16 %v870_v4, %v870_v4 }
 0x347   :  { %v867_v28 = vpack.c.bf16 %v866_v5, %v866_v5  ;;  %v972_v8 = vld [vmem:[#allocation3 + $0x2] sm:$0xff] }
 0x348   :  { %1390 = vmatmul.mubr.msk.bf16.vlgmr.msra.gmra.mxu0 %vm284_vm5, %v871_v7  ;;  %v973_v9 = vpack.c.bf16 %v972_v8, %v972_v8 }
 0x349   :  { %1396 = vmatmul.mubr.msk.bf16.vlgmr.msra.gmra.mxu1 %vm284_vm5, %v867_v28  ;;  %1400 = vmatpush3.bf16.msra.mxu0 %v1443_v6 }
 0x34a   :  { %1401 = vmatprep.mubr.msk.bf16.mxu0 %vm1519_vm2, %v1518_v1  ;;  %1411 = vmatprep.subr.bf16.mxu0 %v1518_v1 }
 0x34b   :  { %1407 = vmatprep.mubr.msk.bf16.mxu1 %vm1519_vm2, %v1518_v1  ;;  %1406 = vmatpush3.bf16.msra.mxu1 %v1444_v10 }
 0x34c   :  { %1417 = vmatprep.subr.bf16.mxu1 %v1518_v1 }
 0x350   :  { %1402 = vmatmul.mubr.msk.bf16.vlgmr.msra.gmra.mxu0 %vm284_vm5, %v973_v9 }
 0x351   :  { %1413 = vmatprep.mubr.msk.bf16.mxu0 %vm1519_vm2, %v1518_v1  ;;  %1412 = vmatpush3.bf16.msra.mxu0 %v1445_v11 }
 0x3be   :  { %v658_v36 = vpop.trf.xlu1 }
 0x3bf   :  { %675 = vst.msk [vmem:[%s1746_s8] sm:$0xff] %vm674_vm9, %v658_v36 }
 0x3c2   :  { %v659_v59 = vpop.trf.xlu1 }
 0x3c3   :  { %676 = vst.msk [vmem:[%s1746_s8 + $0x8] sm:$0xff] %vm674_vm9, %v659_v59 }
 0x408   :  { %v917_v12 = vpop.f32.mrf.mxu0 }
 0x409   :  { %v966_v13 = vpop.f32.mrf.mxu1 }
 0x40a   :  { %v1391_v14 = vpop.f32.mrf.mxu0  ;;  %v967_v20 = vadd.f32 %v966_v13, %v917_v12 }
 0x40b   :  { %v1397_v15 = vpop.f32.mrf.mxu1 }
 0x40c   :  { %v920_v16 = vpop.f32.mrf.mxu0 }
 0x40d   :  { %v969_v17 = vpop.f32.mrf.mxu1 }
 0x40e   :  { %v1392_v18 = vpop.f32.mrf.mxu0 }
 0x40f   :  { %v1398_v19 = vpop.f32.mrf.mxu1 }
 0x410   :  { %v1019_v21 = vpop.f32.mrf.mxu0 }
 0x411   :  { %v1025_v22 = vadd.f32 %v1019_v21, %v967_v20 }
 0x412   :  { %v1403_v23 = vpop.f32.mrf.mxu0 }
 0x413   :  { %v1026_v24 = vadd.f32 %v1639_v58, %v1025_v22 }
 0x414   :  { %v1022_v25 = vpop.f32.mrf.mxu0 }
 0x415   :  { %v1027_v26 = vmax.f32 %v1026_v24, 0.0 }
 0x416   :  { %v1404_v27 = vpop.f32.mrf.mxu0 }
 0x417   :  { %1028 = vst.msk [vmem:[#allocation4 + $0x1] sm:$0xff] %vm284_vm5, %v1027_v26 }
 0x41e   :  { %v1033_v29 = vld [vmem:[#allocation4 + $0x1] sm:$0xff] }
 0x41f   :  { %v1029_v30 = vld [vmem:[#allocation4] sm:$0xff]  ;;  %v1034_v32 = vpack.c.bf16 %v1033_v29, %v1033_v29 }
 0x420   :  { %v1030_v33 = vpack.c.bf16 %v1029_v30, %v1029_v30  ;;  %v1135_v35 = vld [vmem:[#allocation4 + $0x2] sm:$0xff] }
 0x421   :  { %1408 = vmatmul.mubr.msk.bf16.vlgmr.msra.gmra.mxu1 %vm284_vm5, %v1034_v32  ;;  %v1136_v58 = vpack.c.bf16 %v1135_v35, %v1135_v35 }
 0x422   :  { %1414 = vmatmul.mubr.msk.bf16.vlgmr.msra.gmra.mxu0 %vm284_vm5, %v1030_v33  ;;  %1418 = vmatpush3.bf16.msra.mxu1 %v1446_v31 }
 0x423   :  { %1419 = vmatprep.mubr.msk.bf16.mxu1 %vm1519_vm2, %v1518_v1 }
 0x429   :  { %1420 = vmatmul.mubr.msk.bf16.vlgmr.msra.gmra.mxu1 %vm284_vm5, %v1136_v58 }
 0x4e1   :  { %v1080_v37 = vpop.f32.mrf.mxu1 }
 0x4e2   :  { %v1129_v38 = vpop.f32.mrf.mxu0 }
 0x4e3   :  { %v1409_v39 = vpop.f32.mrf.mxu1  ;;  %v1130_v1 = vadd.f32 %v1129_v38, %v1080_v37 }
 0x4e4   :  { %v1415_v40 = vpop.f32.mrf.mxu0 }
 0x4e5   :  { %v1083_v41 = vpop.f32.mrf.mxu1 }
 0x4e6   :  { %v1132_v42 = vpop.f32.mrf.mxu0 }
 0x4e7   :  { %v1410_v43 = vpop.f32.mrf.mxu1 }
 0x4e8   :  { %v1416_v44 = vpop.f32.mrf.mxu0 }
 0x4e9   :  { %v1182_v45 = vpop.f32.mrf.mxu1 }
 0x4ea   :  { %v1188_v46 = vadd.f32 %v1182_v45, %v1130_v1 }
 0x4eb   :  { %v1421_v47 = vpop.f32.mrf.mxu1 }
 0x4ec   :  { %v1189_v49 = vadd.f32 %v1675_v34, %v1188_v46  ;;  %v660_v34 = vpop.trf.xlu1 }
 0x4ed   :  { %v1185_v50 = vpop.f32.mrf.mxu1  ;;  %677 = vst.msk [vmem:[%s1746_s8 + $0x10] sm:$0xff] %vm674_vm9, %v660_v34 }
 0x4ee   :  { %v1190_v51 = vmax.f32 %v1189_v49, 0.0 }
 0x4ef   :  { %v1422_v52 = vpop.f32.mrf.mxu1 }
 0x4f0   :  { %1191 = vst.msk [vmem:[#allocation5 + $0x1] sm:$0xff] %vm627_vm8, %v1190_v51  ;;  %v661_v61 = vpop.trf.xlu1 }
 0x4f1   :  { %678 = vst.msk [vmem:[%s1746_s8 + $0x18] sm:$0xff] %vm674_vm9, %v661_v61 }
 0x4f7   :  { %v1192_v53 = vld [vmem:[#allocation5] ss:$2 sm:$0x1f]  ;;  %v1193_v54 = vld [vmem:[#allocation5 + $0x1] ss:$2 sm:$0x1f] }
 0x4f8   :  { %v1194_v55 = vadd.f32 %v1193_v54, %v1192_v53  ;;  %v1195_v56 = vld [vmem:[#allocation5 + $0x2] ss:$2 sm:$0x1f] }
 0x4fa   :  { %v1196_v57 = vadd.f32 %v1195_v56, %v1194_v55 }
 0x4fc   :  { %v1197_v60 = vmul.f32 %v1196_v57, %v1680_v63 }
 0x4fe   :  { %1198 = vxpose.xlu0.b32.start.end [1/1] (short) (narrow) %v1197_v60, 32 }
 0x527   :  { %1434 = vset.pattern.permute.xlu0 %v1520_v48 }
 0x57a   :  { %v1214_v62 = vpop.trf.xlu0 }
 0x57b   :  { %1275 = vst.msk [vmem:[%s1746_s8 + $0x20] sm:$0xff] %vm674_vm9, %v1214_v62 }
 0x57e   :  { %v1215_v63 = vpop.trf.xlu0 }
 0x57f   :  { %1276 = vst.msk [vmem:[%s1746_s8 + $0x28] sm:$0xff] %vm674_vm9, %v1215_v63 }
 0x582   :  { %v1216_v0 = vpop.trf.xlu0 }
 0x583   :  { %1277 = vst.msk [vmem:[%s1746_s8 + $0x30] sm:$0xff] %vm674_vm9, %v1216_v0 }
 0x586   :  { %v1217_v2 = vpop.trf.xlu0 }
 0x587   :  { %1278 = vst.msk [vmem:[%s1746_s8 + $0x38] sm:$0xff] %vm674_vm9, %v1217_v2 }
 0x588   :  { %1239 = vsyncpa [#allocation7], 1 }
 0x589   :  { %1240 = vsyncpa [#allocation9], 1 }

</bundles_post_ra>
